<compile_context>
chip_gen: v6e
topology: v6e:2x2x1
jax: 0.10.0
libtpu: 0.0.40
codegen_flags: <defaults>
</compile_context>

<pallas_src>
import functools

import jax
import jax.numpy as jnp
from jax.experimental import pallas as pl
from jax.experimental.pallas import tpu as pltpu


def _round_up(x, m):
    return ((x + m - 1) // m) * m


def _bigram_train_kernel(idx_ref, tgt_ref, table_ref, logits_ref, nll_ref):
    """One row tile: one-hot @ table on the MXU + fused cross-entropy.

    idx_ref    : (TILE, 1)  int32  token ids
    tgt_ref    : (TILE, 1)  int32  target ids
    table_ref  : (VR, VP)   f32    padded embedding table (VMEM resident --
                                   same block every grid step)
    logits_ref : (TILE, VP) f32    lane-dense logits tile (single dense store)
    nll_ref    : (TILE, 1)  f32    per-row NLL partials (lse - target_logit)
    """
    tile, vp = logits_ref.shape
    vr = table_ref.shape[0]

    ids = idx_ref[...]                                   # (TILE, 1) int32
    tgt = tgt_ref[...]                                   # (TILE, 1) int32

    # Embedding gather as one-hot x table: runs on the otherwise-idle MXU and
    # yields the whole tile in one shot.  HIGHEST precision keeps the f32 table
    # values exact (one-hot selection => exact row copy).
    vocab_iota = jax.lax.broadcasted_iota(jnp.int32, (tile, vr), 1)
    onehot = (vocab_iota == ids).astype(jnp.float32)     # (TILE, VR)
    logits = jnp.dot(onehot, table_ref[...],
                     preferred_element_type=jnp.float32,
                     precision=jax.lax.Precision.HIGHEST)  # (TILE, VP)

    # Single dense (unmasked) store of the tile; the same vreg-resident value
    # feeds the loss math below (no VMEM re-read).
    logits_ref[...] = logits

    # Vectorized target-logit pick: lane-iota compare + one lane reduce.
    lane = jax.lax.broadcasted_iota(jnp.int32, (tile, vp), 1)
    tgt_logit = jnp.sum(jnp.where(lane == tgt, logits, 0.0),
                        axis=-1, keepdims=True)          # (TILE, 1)

    # Numerically stable logsumexp; padded vocab columns are -1e30 so they
    # never win the max and exp() underflows cleanly to 0.
    m = jnp.max(logits, axis=-1, keepdims=True)
    lse = m + jnp.log(jnp.sum(jnp.exp(logits - m), axis=-1, keepdims=True))
    nll_ref[...] = lse - tgt_logit


def _bigram_logits_kernel(idx_ref, table_ref, logits_ref):
    """Inference path: one-hot @ table gather only (no softmax / loss work)."""
    tile, vp = logits_ref.shape
    vr = table_ref.shape[0]
    ids = idx_ref[...]                                   # (TILE, 1) int32
    vocab_iota = jax.lax.broadcasted_iota(jnp.int32, (tile, vr), 1)
    onehot = (vocab_iota == ids).astype(jnp.float32)
    logits_ref[...] = jnp.dot(onehot, table_ref[...],
                              preferred_element_type=jnp.float32,
                              precision=jax.lax.Precision.HIGHEST)


def _pad_table(table, vr, vp):
    """Pad (V, V) -> (VR, VP): rows to x8 (never selected, zeros), columns to
    a lane-dense x128 with -1e30 (ignored by logsumexp/softmax)."""
    v = table.shape[0]
    table_p = jnp.zeros((vr, vp), jnp.float32)
    table_p = table_p.at[:v, :v].set(table.astype(jnp.float32))
    if vp > v:
        table_p = table_p.at[:v, v:].set(-1e30)
    return table_p


def _flatten_pad_ids(x, n, n_pad):
    """Flatten (B, T) int ids to a (N_pad, 1) int32 column (padding = 0)."""
    out = jnp.zeros((n_pad, 1), jnp.int32)
    return out.at[:n, 0].set(x.reshape(-1).astype(jnp.int32))


def _tiling(n, tile_n):
    tile = max(8, min(_round_up(tile_n, 8), _round_up(n, 8)))
    n_tiles = pl.cdiv(n, tile)
    return tile, n_tiles, n_tiles * tile


@functools.partial(jax.jit, static_argnames=("tile_n",))
def bigram_forward(idx, targets, table, tile_n=512):
    """Training path: returns (logits (B*T, V), scalar mean cross-entropy)."""
    b, t = idx.shape
    v = table.shape[0]
    n = b * t

    vp = _round_up(max(v, 128), 128)          # lane-dense vocab (columns)
    vr = _round_up(v, 8)                      # sublane-aligned vocab (rows)
    tile, n_tiles, n_pad = _tiling(n, tile_n)

    idx_col = _flatten_pad_ids(idx, n, n_pad)
    tgt_col = _flatten_pad_ids(targets, n, n_pad)
    table_p = _pad_table(table, vr, vp)

    logits_p, nll = pl.pallas_call(
        _bigram_train_kernel,
        out_shape=(
            jax.ShapeDtypeStruct((n_pad, vp), jnp.float32),
            jax.ShapeDtypeStruct((n_pad, 1), jnp.float32),
        ),
        grid_spec=pltpu.PrefetchScalarGridSpec(
            num_scalar_prefetch=0,
            grid=(n_tiles,),
            in_specs=[
                pl.BlockSpec((tile, 1), lambda i: (i, 0)),   # token ids
                pl.BlockSpec((tile, 1), lambda i: (i, 0)),   # targets
                pl.BlockSpec((vr, vp), lambda i: (0, 0)),    # table (resident)
            ],
            out_specs=[
                pl.BlockSpec((tile, vp), lambda i: (i, 0)),  # logits
                pl.BlockSpec((tile, 1), lambda i: (i, 0)),   # per-row NLL
            ],
        ),
        compiler_params=pltpu.CompilerParams(
            dimension_semantics=("parallel",)),
    )(idx_col, tgt_col, table_p)

    # Slice back to the module's exact shapes (padded lanes are -1e30 and
    # padded rows are discarded before the mean).
    logits = logits_p[:n, :v]
    loss = jnp.sum(nll[:n, 0]) / n
    return logits, loss


@functools.partial(jax.jit, static_argnames=("tile_n",))
def bigram_forward_no_targets(idx, table, tile_n=512):
    """Inference path (targets=None): returns (logits (B, T, V), None)."""
    b, t = idx.shape
    v = table.shape[0]
    n = b * t

    vp = _round_up(max(v, 128), 128)
    vr = _round_up(v, 8)
    tile, n_tiles, n_pad = _tiling(n, tile_n)

    idx_col = _flatten_pad_ids(idx, n, n_pad)
    table_p = _pad_table(table, vr, vp)

    logits_p = pl.pallas_call(
        _bigram_logits_kernel,
        out_shape=jax.ShapeDtypeStruct((n_pad, vp), jnp.float32),
        grid_spec=pltpu.PrefetchScalarGridSpec(
            num_scalar_prefetch=0,
            grid=(n_tiles,),
            in_specs=[
                pl.BlockSpec((tile, 1), lambda i: (i, 0)),
                pl.BlockSpec((vr, vp), lambda i: (0, 0)),
            ],
            out_specs=pl.BlockSpec((tile, vp), lambda i: (i, 0)),
        ),
        compiler_params=pltpu.CompilerParams(
            dimension_semantics=("parallel",)),
    )(idx_col, table_p)

    logits = logits_p[:n, :v].reshape(b, t, v)
    return logits, None


# TODO(synk): generate() (autoregressive torch.multinomial sampling loop) is
# host-side control flow, not implemented as a Pallas kernel.


if __name__ == "__main__":
    vocab_size = 65          # e.g. tiny-shakespeare character vocab
    B, T = 2, 8

    key = jax.random.PRNGKey(0)
    k_table, k_idx, k_tgt = jax.random.split(key, 3)

    # nn.Embedding default init ~ N(0, 1)
    table = jax.random.normal(k_table, (vocab_size, vocab_size),
                              dtype=jnp.float32)
    idx = jax.random.randint(k_idx, (B, T), 0, vocab_size, dtype=jnp.int32)
    targets = jax.random.randint(k_tgt, (B, T), 0, vocab_size, dtype=jnp.int32)

    # training path (targets provided)
    logits, loss = bigram_forward(idx, targets, table)
    logits = jax.block_until_ready(logits)
    loss = jax.block_until_ready(loss)

    # pure-JAX reference
    ref_logits = table[idx.reshape(-1)]                                  # (N,V)
    ref_lse = jax.scipy.special.logsumexp(ref_logits, axis=-1)
    ref_loss = jnp.mean(ref_lse - ref_logits[jnp.arange(B * T),
                                             targets.reshape(-1)])
    assert jnp.allclose(logits, ref_logits, atol=1e-5), "logits mismatch"
    assert jnp.allclose(loss, ref_loss, atol=1e-5), "loss mismatch"

    # inference path (targets=None)
    inf_logits, inf_loss = bigram_forward_no_targets(idx, table)
    inf_logits = jax.block_until_ready(inf_logits)
    assert inf_loss is None
    assert jnp.allclose(inf_logits.reshape(B * T, vocab_size), ref_logits,
                        atol=1e-5), "inference logits mismatch"

    print("KERNEL_OK")
</pallas_src>

<mosaic_0001>
module attributes {stable_mosaic.version = 11 : i64} {
  func.func @_bigram_train_kernel(%arg0: i32, %arg1: memref<16x1xi32, #tpu.memory_space<vmem>>, %arg2: memref<16x1xi32, #tpu.memory_space<vmem>>, %arg3: memref<72x128xf32, #tpu.memory_space<vmem>>, %arg4: memref<16x128xf32, #tpu.memory_space<vmem>>, %arg5: memref<16x1xf32, #tpu.memory_space<vmem>>) attributes {dimension_semantics = [#tpu.dimension_semantics<parallel>], iteration_bounds = array<i64: 1>, scalar_prefetch = 0 : i64, scratch_operands = 0 : i64, tpu.core_type = #tpu.core_type<tc>, window_params = [{transform_indices = @transform_0, window_bounds = array<i64: 16, 1>}, {transform_indices = @transform_1, window_bounds = array<i64: 16, 1>}, {pipeline_mode = #tpu.pipeline_mode<synchronous>, transform_indices = @transform_2, window_bounds = array<i64: 72, 128>}, {transform_indices = @transform_3, window_bounds = array<i64: 16, 128>}, {transform_indices = @transform_4, window_bounds = array<i64: 16, 1>}]} {
    %c0 = arith.constant 0 : index
    %c0_0 = arith.constant 0 : index
    %0 = vector.load %arg1[%c0, %c0_0] : memref<16x1xi32, #tpu.memory_space<vmem>>, vector<16x1xi32>
    %c0_1 = arith.constant 0 : index
    %c0_2 = arith.constant 0 : index
    %1 = vector.load %arg2[%c0_1, %c0_2] : memref<16x1xi32, #tpu.memory_space<vmem>>, vector<16x1xi32>
    %2 = tpu.iota {dimensions = array<i32: 1>} : vector<16x72xi32>
    %3 = vector.broadcast %0 : vector<16x1xi32> to vector<16x72xi32>
    %4 = arith.cmpi eq, %2, %3 : vector<16x72xi32>
    %5 = arith.extui %4 : vector<16x72xi1> to vector<16x72xi32>
    %6 = arith.sitofp %5 : vector<16x72xi32> to vector<16x72xf32>
    %c0_3 = arith.constant 0 : index
    %c0_4 = arith.constant 0 : index
    %7 = vector.load %arg3[%c0_3, %c0_4] : memref<72x128xf32, #tpu.memory_space<vmem>>, vector<72x128xf32>
    %cst = arith.constant dense<0.000000e+00> : vector<16x128xf32>
    %8 = tpu.matmul %6, %7, %cst {dimension_numbers = #tpu.dot_dimension_numbers<[1], [0], [0], [1], [0, 0, 1, 1], [], []>, precision = #tpu.contract_precision<fp32>} : vector<16x72xf32>, vector<72x128xf32>, vector<16x128xf32> -> vector<16x128xf32>
    %c0_5 = arith.constant 0 : index
    %c0_6 = arith.constant 0 : index
    %9 = vector.load %arg4[%c0_5, %c0_6] : memref<16x128xf32, #tpu.memory_space<vmem>>, vector<16x128xf32>
    tpu.vector_store %arg4[%c0_5, %c0_6], %8 {strides = array<i32>} : memref<16x128xf32, #tpu.memory_space<vmem>>, vector<16x128xf32>,
    %10 = tpu.iota {dimensions = array<i32: 1>} : vector<16x128xi32>
    %11 = vector.broadcast %1 : vector<16x1xi32> to vector<16x128xi32>
    %12 = arith.cmpi eq, %10, %11 : vector<16x128xi32>
    %cst_7 = arith.constant 0.000000e+00 : f32
    %13 = vector.broadcast %cst_7 : f32 to vector<16x128xf32>
    %14 = arith.select %12, %8, %13 : vector<16x128xi1>, vector<16x128xf32>
    %cst_8 = arith.constant dense<0.000000e+00> : vector<16xf32>
    %15 = vector.multi_reduction <add>, %14, %cst_8 [1] : vector<16x128xf32> to vector<16xf32>
    %16 = vector.shape_cast %15 : vector<16xf32> to vector<16x1xf32>
    %cst_9 = arith.constant dense<0xFF800000> : vector<16xf32>
    %17 = vector.multi_reduction <maximumf>, %8, %cst_9 [1] : vector<16x128xf32> to vector<16xf32>
    %18 = vector.shape_cast %17 : vector<16xf32> to vector<16x1xf32>
    %19 = vector.broadcast %18 : vector<16x1xf32> to vector<16x128xf32>
    %20 = arith.subf %8, %19 : vector<16x128xf32>
    %21 = math.exp %20 : vector<16x128xf32>
    %cst_10 = arith.constant dense<0.000000e+00> : vector<16xf32>
    %22 = vector.multi_reduction <add>, %21, %cst_10 [1] : vector<16x128xf32> to vector<16xf32>
    %23 = vector.shape_cast %22 : vector<16xf32> to vector<16x1xf32>
    %24 = math.log %23 : vector<16x1xf32>
    %25 = arith.addf %18, %24 : vector<16x1xf32>
    %26 = arith.subf %25, %16 : vector<16x1xf32>
    %c0_11 = arith.constant 0 : index
    %c0_12 = arith.constant 0 : index
    %27 = vector.load %arg5[%c0_11, %c0_12] : memref<16x1xf32, #tpu.memory_space<vmem>>, vector<16x1xf32>
    tpu.vector_store %arg5[%c0_11, %c0_12], %26 {strides = array<i32>} : memref<16x1xf32, #tpu.memory_space<vmem>>, vector<16x1xf32>,
    return
  }
  func.func @transform_0(%arg0: i32) -> (i32, i32) {
    %c0_i32 = arith.constant 0 : i32
    %c0_i32_0 = arith.constant 0 : i32
    return %arg0, %c0_i32 : i32, i32
  }
  func.func @transform_1(%arg0: i32) -> (i32, i32) {
    %c0_i32 = arith.constant 0 : i32
    %c0_i32_0 = arith.constant 0 : i32
    return %arg0, %c0_i32 : i32, i32
  }
  func.func @transform_2(%arg0: i32) -> (i32, i32) {
    %c0_i32 = arith.constant 0 : i32
    %c0_i32_0 = arith.constant 0 : i32
    %c0_i32_1 = arith.constant 0 : i32
    return %c0_i32, %c0_i32_0 : i32, i32
  }
  func.func @transform_3(%arg0: i32) -> (i32, i32) {
    %c0_i32 = arith.constant 0 : i32
    %c0_i32_0 = arith.constant 0 : i32
    return %arg0, %c0_i32 : i32, i32
  }
  func.func @transform_4(%arg0: i32) -> (i32, i32) {
    %c0_i32 = arith.constant 0 : i32
    %c0_i32_0 = arith.constant 0 : i32
    return %arg0, %c0_i32 : i32, i32
  }
}

</mosaic_0001>

<bundles_post_ra>
// kernel: bigram_forward.1
= control target key start
LH: loop header
LB: loop body
LE: loop exit
PB: predicated region body
PF: predicated region fallthrough
CT: control target
= control target key end

     0   :  { %v942_v1 = vmov 0   ;;  %s1226_s0 = inlined_call_operand.vmem [shape: s32[16,1], index: 0, kind: input, shape index: {}]   ;;  %s1227_s1 = inlined_call_operand.vmem [shape: s32[16,1], index: 1, kind: input, shape index: {}]   ;;  %s1228_s2 = inlined_call_operand.vmem [shape: f32[72,128], index: 2, kind: input, shape index: {}]   ;;  %s1229_s3 = inlined_call_operand.hbm [shape: f32[16,128], index: 3, kind: output, shape index: {0}]   ;;  %s1230_s4 = inlined_call_operand.vmem [shape: f32[16,1], index: 4, kind: output, shape index: {1}]  }
   0x1   :  { %v17_v0 = vld [vmem:[%s1226_s0] sm:$0xff]  ;;  %910 = vset.pattern.permute.xlu0 %v942_v1  ;;  %v42_v3 = vld [vmem:[%s1228_s2 + $0x38] sm:$0xff]  ;;  %v41_v4 = vld [vmem:[%s1228_s2 + $0x30] sm:$0xff]  ;;  %911 = vset.pattern.permute.xlu1 %v942_v1 }
   0x2   :  { %v43_v2 = vld [vmem:[%s1228_s2 + $0x40] sm:$0xff]  ;;  %24 = vperm.xlu0 %910, %v17_v0   ;;  %v986_v6 = vand.u32 4294901760, %v42_v3  ;;  %v988_v7 = vand.u32 4294901760, %v41_v4  ;;  %v40_v8 = vld [vmem:[%s1228_s2 + $0x28] sm:$0xff]  ;;  %v38_v10 = vld [vmem:[%s1228_s2 + $0x18] sm:$0xff] }
   0x3   :  { %v984_v5 = vand.u32 4294901760, %v43_v2  ;;  %v39_v9 = vld [vmem:[%s1228_s2 + $0x20] sm:$0xff]  ;;  %v18_v11 = vld [vmem:[%s1226_s0 + $0x8] sm:$0xff]  ;;  %v1002_v12 = vand.u32 4294901760, %v40_v8  ;;  %v1006_v14 = vand.u32 4294901760, %v38_v10  ;;  %v37_v15 = vld [vmem:[%s1228_s2 + $0x10] sm:$0xff] }
   0x4   :  { %v1004_v13 = vand.u32 4294901760, %v39_v9  ;;  %v36_v16 = vld [vmem:[%s1228_s2 + $0x8] sm:$0xff]  ;;  %v1018_v18 = vsub.f32 %v42_v3, %v986_v6  ;;  %v1021_v19 = vsub.f32 %v41_v4, %v988_v7  ;;  %v1024_v20 = vand.u32 4294901760, %v37_v15 }
   0x5   :  { %v1015_v17 = vsub.f32 %v43_v2, %v984_v5  ;;  %779 = vmatprep.subr.mxu0 %v984_v5 }
   0x6   :  { %10 = vsyncpa [#allocation3], 0  ;;  %v1027_v21 = vsub.f32 %v40_v8, %v1002_v12  ;;  %v1030_v22 = vsub.f32 %v39_v9, %v1004_v13  ;;  %780 = vmatpush3.msra.mxu0 %v984_v5  ;;  %v1034_v23 = vsub.f32 %v38_v10, %v1006_v14  ;;  %27 = vperm.xlu0 %910, %v18_v11   ;;  %v1040_v25 = vand.u32 4294901760, %v1018_v18  ;;  %v19_v28 = vld [vmem:[%s1227_s1] sm:$0xff] }
   0x7   :  { %v1037_v24 = vand.u32 4294901760, %v1015_v17  ;;  %v1043_v26 = vand.u32 4294901760, %v1021_v19  ;;  %781 = vmatprep.subr.mxu0 %v986_v6  ;;  %v1046_v27 = vand.u32 4294901760, %v36_v16  ;;  %v1056_v30 = vsub.f32 %v37_v15, %v1024_v20  ;;  %v35_v36 = vld [vmem:[%s1228_s2] sm:$0xff] }
   0x8   :  { %v1052_v29 = vand.u32 4294901760, %v1027_v21  ;;  %782 = vmatpush3.msra.mxu0 %v986_v6  ;;  %v170_v32 = vsub.f32 %v1018_v18, %v1040_v25  ;;  %v1065_v34 = vand.u32 4294901760, %v1030_v22  ;;  %v1069_v35 = vand.u32 4294901760, %v1034_v23 }
   0x9   :  { %v163_v31 = vsub.f32 %v1015_v17, %v1037_v24  ;;  %v177_v33 = vsub.f32 %v1021_v19, %v1043_v26  ;;  %783 = vmatprep.subr.mxu0 %v988_v7  ;;  %v1078_v40 = vsub.f32 %v36_v16, %v1046_v27  ;;  %v1085_v43 = vand.u32 4294901760, %v1056_v30 }
   0xa   :  { %784 = vmatpush3.msra.mxu0 %v988_v7  ;;  %647 = vperm.xlu0 %910, %v19_v28   ;;  %v171_v38 = vand.u32 4294901760, %v170_v32  ;;  %v184_v39 = vsub.f32 %v1027_v21, %v1052_v29  ;;  %v191_v42 = vsub.f32 %v1030_v22, %v1065_v34  ;;  %v1087_v44 = vand.u32 4294901760, %v35_v36 }
   0xb   :  { %v164_v37 = vand.u32 4294901760, %v163_v31  ;;  %785 = vmatprep.subr.mxu0 %v1002_v12  ;;  %v178_v41 = vand.u32 4294901760, %v177_v33  ;;  %v198_v46 = vsub.f32 %v1034_v23, %v1069_v35  ;;  %v1094_v47 = vand.u32 4294901760, %v1078_v40  ;;  %v20_v33 = vld [vmem:[%s1227_s1 + $0x8] sm:$0xff]  ;;  %s944_s1 = smov [#allocation2]  }
   0xc   :  { %786 = vmatpush3.msra.mxu0 %v1002_v12  ;;  %v185_v45 = vand.u32 4294901760, %v184_v39  ;;  %v1097_v48 = vsub.f32 %v35_v36, %v1087_v44  ;;  %v192_v49 = vand.u32 4294901760, %v191_v42  ;;  %v205_v50 = vsub.f32 %v1056_v30, %v1085_v43  ;;  %s690_s13 = sshll.u32 %s944_s1, 4  ;;  %s691_s13 = int_to_ptr.vmem [resolvable:$true] %s690_s13 }
   0xd   :  { %800 = vmatprep.subr.mxu1 %v164_v37  ;;  %787 = vmatprep.subr.mxu0 %v1004_v13  ;;  %v199_v52 = vand.u32 4294901760, %v198_v46  ;;  %v212_v53 = vsub.f32 %v1078_v40, %v1094_v47  ;;  %v21_v58 = vlaneseq  ;;  %vm44_vm0 = vcmask 588800   ;;  %s920_s14 = scalar_lea.vmem %s691_s13, 256  ;;  %p925_p1 = scmp.lt.s32.totalorder %s691_s13, %s691_s13 }
   0xe   :  { %801 = vmatpush3.msra.mxu1 %v164_v37  ;;  %788 = vmatpush3.msra.mxu0 %v1004_v13  ;;  %v1104_v51 = vand.u32 4294901760, %v1097_v48  ;;  %v206_v54 = vand.u32 4294901760, %v205_v50  ;;  %v943_v61 = vmov 0.0   ;;  %p921_p0 = scmp.ne.s32.totalorder %s691_s13, %s920_s14  ;;  %p926_p2 = scmp.lt.s32.totalorder %s920_s14, %s920_s14 }
   0xf   :  { %802 = vmatprep.subr.mxu1 %v171_v38  ;;  %789 = vmatprep.subr.mxu0 %v1006_v14  ;;  %v213_v56 = vand.u32 4294901760, %v212_v53  ;;  %v1118_v59 = vand.u32 127, %v21_v58 }
  0x10   :  { %803 = vmatpush3.msra.mxu1 %v171_v38  ;;  %790 = vmatpush3.msra.mxu0 %v1006_v14  ;;  %v219_v55 = vsub.f32 %v1097_v48, %v1104_v51  ;;  %p927_p3 = por %p926_p2, %p925_p1 }
  0x11   :  { %804 = vmatprep.subr.mxu1 %v178_v41  ;;  %791 = vmatprep.subr.mxu0 %v1024_v20 }
  0x12   :  { %805 = vmatpush3.msra.mxu1 %v178_v41  ;;  %792 = vmatpush3.msra.mxu0 %v1024_v20  ;;  %v220_v57 = vand.u32 4294901760, %v219_v55  ;;  %p928_p4 = pnand %p927_p3, %p921_p0 }
  0x13   :  { %806 = vmatprep.subr.mxu1 %v185_v45  ;;  %793 = vmatprep.subr.mxu0 %v1046_v27 }
  0x14   :  { %807 = vmatpush3.msra.mxu1 %v185_v45  ;;  %794 = vmatpush3.msra.mxu0 %v1046_v27 }
  0x15   :  { %808 = vmatprep.subr.mxu1 %v192_v49  ;;  %795 = vmatprep.subr.mxu0 %v1087_v44 }
  0x16   :  { %809 = vmatpush3.msra.mxu1 %v192_v49  ;;  %796 = vmatpush3.msra.mxu0 %v1087_v44 }
  0x17   :  { %810 = vmatprep.subr.mxu1 %v199_v52  ;;  %821 = vmatprep.subr.mxu0 %v1015_v17 }
  0x18   :  { %811 = vmatpush3.msra.mxu1 %v199_v52 }
  0x19   :  { %812 = vmatprep.subr.mxu1 %v206_v54 }
  0x1a   :  { %813 = vmatpush3.msra.mxu1 %v206_v54 }
  0x1b   :  { %814 = vmatprep.subr.mxu1 %v213_v56 }
  0x1c   :  { %815 = vmatpush3.msra.mxu1 %v213_v56 }
  0x1d   :  { %816 = vmatprep.subr.mxu1 %v220_v57 }
  0x1e   :  { %817 = vmatpush3.msra.mxu1 %v220_v57 }
  0x1f   :  { %842 = vmatprep.subr.mxu1 %v984_v5 }
  0x7d   :  { %v25_v60 = vpop.permute.xlu0 %24 }
  0x7e   :  { %vm29_vm1 = vcmp.eq.s32.totalorder %v1118_v59, %v25_v60 }
  0x7f   :  { %v1121_v62 = vsel %vm29_vm1, 1.0, %v943_v61 }
  0x80   :  { %v46_v63 = vsel %vm44_vm0, %v1121_v62, 0  ;;  %818 = vmatprep.mubr.msk.f32.mxu1 %vm44_vm0, %v1121_v62 }
  0x81   :  { %v126_v0 = vsub.f32 %v46_v63, %v46_v63  ;;  %v28_v1 = vpop.permute.xlu0 %27 }
  0x82   :  { %vm30_vm2 = vcmp.eq.s32.totalorder %v1118_v59, %v28_v1 }
  0x83   :  { %v1128_v2 = vsel %vm30_vm2, 1.0, %v943_v61  ;;  %v127_v3 = vand.u32 4294901760, %v126_v0 }
  0x84   :  { %v49_v4 = vsel %vm44_vm0, %v1128_v2, 0  ;;  %819 = vmatmul.mubr.msk.f32.vlgmr.msra.gmra.mxu1 %vm44_vm0, %v1128_v2 }
  0x85   :  { %v136_v8 = vsub.f32 %v49_v4, %v49_v4  ;;  %843 = vmatpush3.msra.mxu1 %v984_v5  ;;  %860 = vmatprep.mubr.f32.mxu1 %v127_v3  ;;  %v128_v9 = vsub.f32 %v126_v0, %v127_v3  ;;  %v648_v41 = vpop.permute.xlu0 %647 }
  0x86   :  { %844 = vmatprep.subr.mxu1 %v986_v6  ;;  %vm652_vm3 = vcmp.eq.s32.totalorder %v1118_v59, %v648_v41 }
  0x87   :  { %845 = vmatpush3.msra.mxu1 %v986_v6  ;;  %v129_v10 = vand.u32 4294901760, %v128_v9  ;;  %v137_v11 = vand.u32 4294901760, %v136_v8 }
  0x88   :  { %846 = vmatprep.subr.mxu1 %v988_v7 }
  0x89   :  { %847 = vmatpush3.msra.mxu1 %v988_v7  ;;  %797 = vmatprep.mubr.f32.mxu0 %v129_v10  ;;  %v138_v15 = vsub.f32 %v136_v8, %v137_v11 }
  0x8a   :  { %848 = vmatprep.subr.mxu1 %v1002_v12 }
  0x8b   :  { %849 = vmatpush3.msra.mxu1 %v1002_v12  ;;  %v139_v16 = vand.u32 4294901760, %v138_v15 }
  0x8c   :  { %850 = vmatprep.subr.mxu1 %v1004_v13 }
  0x8d   :  { %851 = vmatpush3.msra.mxu1 %v1004_v13  ;;  %798 = vmatmul.mubr.f32.vlgmr.msra.gmra.mxu0 %v139_v16 }
  0x8e   :  { %822 = vmatpush3.msra.mxu0 %v1015_v17  ;;  %852 = vmatprep.subr.mxu1 %v1006_v14 }
  0x8f   :  { %823 = vmatprep.subr.mxu0 %v1018_v18  ;;  %839 = vmatprep.mubr.f32.mxu0 %v126_v0 }
  0x90   :  { %853 = vmatpush3.msra.mxu1 %v1006_v14  ;;  %824 = vmatpush3.msra.mxu0 %v1018_v18 }
  0x91   :  { %854 = vmatprep.subr.mxu1 %v1024_v20  ;;  %825 = vmatprep.subr.mxu0 %v1021_v19 }
  0x92   :  { %855 = vmatpush3.msra.mxu1 %v1024_v20  ;;  %826 = vmatpush3.msra.mxu0 %v1021_v19 }
  0x93   :  { %856 = vmatprep.subr.mxu1 %v1046_v27  ;;  %827 = vmatprep.subr.mxu0 %v1027_v21 }
  0x94   :  { %857 = vmatpush3.msra.mxu1 %v1046_v27  ;;  %828 = vmatpush3.msra.mxu0 %v1027_v21 }
  0x95   :  { %858 = vmatprep.subr.mxu1 %v1087_v44  ;;  %829 = vmatprep.subr.mxu0 %v1030_v22 }
  0x96   :  { %859 = vmatpush3.msra.mxu1 %v1087_v44  ;;  %830 = vmatpush3.msra.mxu0 %v1030_v22 }
  0x97   :  { %861 = vmatmul.mubr.f32.vlgmr.msra.gmra.mxu1 %v137_v11  ;;  %884 = vmatprep.subr.mxu1 %v984_v5 }
  0x98   :  { %831 = vmatprep.subr.mxu0 %v1034_v23  ;;  %885 = vmatpush3.msra.mxu1 %v984_v5 }
  0x99   :  { %902 = vmatprep.mubr.msk.f32.mxu1 %vm44_vm0, %v1121_v62  ;;  %832 = vmatpush3.msra.mxu0 %v1034_v23 }
  0x9a   :  { %886 = vmatprep.subr.mxu1 %v986_v6  ;;  %833 = vmatprep.subr.mxu0 %v1056_v30 }
  0x9b   :  { %887 = vmatpush3.msra.mxu1 %v986_v6  ;;  %834 = vmatpush3.msra.mxu0 %v1056_v30 }
  0x9c   :  { %888 = vmatprep.subr.mxu1 %v988_v7  ;;  %835 = vmatprep.subr.mxu0 %v1078_v40 }
  0x9d   :  { %889 = vmatpush3.msra.mxu1 %v988_v7  ;;  %836 = vmatpush3.msra.mxu0 %v1078_v40 }
  0x9e   :  { %890 = vmatprep.subr.mxu1 %v1002_v12  ;;  %837 = vmatprep.subr.mxu0 %v1097_v48 }
  0x9f   :  { %891 = vmatpush3.msra.mxu1 %v1002_v12  ;;  %838 = vmatpush3.msra.mxu0 %v1097_v48 }
  0xa0   :  { %892 = vmatprep.subr.mxu1 %v1004_v13  ;;  %840 = vmatmul.mubr.f32.vlgmr.msra.gmra.mxu0 %v136_v8 }
  0xa1   :  { %863 = vmatprep.subr.mxu0 %v1037_v24  ;;  %893 = vmatpush3.msra.mxu1 %v1004_v13 }
  0xa2   :  { %864 = vmatpush3.msra.mxu0 %v1037_v24  ;;  %881 = vmatprep.mubr.msk.f32.mxu0 %vm44_vm0, %v1121_v62 }
  0xa3   :  { %894 = vmatprep.subr.mxu1 %v1006_v14  ;;  %865 = vmatprep.subr.mxu0 %v1040_v25 }
  0xa4   :  { %895 = vmatpush3.msra.mxu1 %v1006_v14  ;;  %866 = vmatpush3.msra.mxu0 %v1040_v25 }
  0xa5   :  { %896 = vmatprep.subr.mxu1 %v1024_v20  ;;  %867 = vmatprep.subr.mxu0 %v1043_v26 }
  0xa6   :  { %897 = vmatpush3.msra.mxu1 %v1024_v20  ;;  %868 = vmatpush3.msra.mxu0 %v1043_v26 }
  0xa7   :  { %898 = vmatprep.subr.mxu1 %v1046_v27  ;;  %869 = vmatprep.subr.mxu0 %v1052_v29 }
  0xa8   :  { %899 = vmatpush3.msra.mxu1 %v1046_v27  ;;  %870 = vmatpush3.msra.mxu0 %v1052_v29 }
  0xa9   :  { %900 = vmatprep.subr.mxu1 %v1087_v44  ;;  %871 = vmatprep.subr.mxu0 %v1065_v34 }
  0xaa   :  { %901 = vmatpush3.msra.mxu1 %v1087_v44  ;;  %872 = vmatpush3.msra.mxu0 %v1065_v34 }
  0xab   :  { %903 = vmatmul.mubr.msk.f32.vlgmr.msra.gmra.mxu1 %vm44_vm0, %v1128_v2  ;;  %873 = vmatprep.subr.mxu0 %v1069_v35 }
  0xac   :  { %874 = vmatpush3.msra.mxu0 %v1069_v35 }
  0xad   :  { %875 = vmatprep.subr.mxu0 %v1085_v43 }
  0xae   :  { %876 = vmatpush3.msra.mxu0 %v1085_v43 }
  0xaf   :  { %877 = vmatprep.subr.mxu0 %v1094_v47 }
  0xb0   :  { %878 = vmatpush3.msra.mxu0 %v1094_v47 }
  0xb1   :  { %879 = vmatprep.subr.mxu0 %v1104_v51 }
  0xb2   :  { %880 = vmatpush3.msra.mxu0 %v1104_v51 }
  0xb3   :  { %882 = vmatmul.mubr.msk.f32.vlgmr.msra.gmra.mxu0 %vm44_vm0, %v1128_v2 }
 0x144   :  { %v820_v6 = vpop.f32.mrf.mxu1 }
 0x146   :  { %v257_v13 = vpop.f32.mrf.mxu1 }
 0x14d   :  { %v799_v5 = vpop.f32.mrf.mxu0 }
 0x14e   :  { %v264_v14 = vadd.f32 %v820_v6, %v799_v5 }
 0x14f   :  { %v131_v7 = vpop.f32.mrf.mxu0 }
 0x150   :  { %v258_v19 = vadd.f32 %v257_v13, %v131_v7 }
 0x157   :  { %v862_v17 = vpop.f32.mrf.mxu1 }
 0x159   :  { %v442_v22 = vpop.f32.mrf.mxu1 }
 0x160   :  { %v841_v12 = vpop.f32.mrf.mxu0 }
 0x161   :  { %v361_v20 = vadd.f32 %v841_v12, %v264_v14 }
 0x162   :  { %v353_v18 = vpop.f32.mrf.mxu0 }
 0x163   :  { %v354_v21 = vadd.f32 %v353_v18, %v258_v19  ;;  %v451_v23 = vadd.f32 %v862_v17, %v361_v20 }
 0x165   :  { %v443_v27 = vadd.f32 %v442_v22, %v354_v21 }
 0x16b   :  { %v904_v24 = vpop.f32.mrf.mxu1 }
 0x16d   :  { %v634_v31 = vpop.f32.mrf.mxu1 }
 0x173   :  { %v883_v25 = vpop.f32.mrf.mxu0 }
 0x174   :  { %v555_v26 = vadd.f32 %v883_v25, %v451_v23 }
 0x175   :  { %v548_v28 = vpop.f32.mrf.mxu0 }
 0x176   :  { %v641_v29 = vadd.f32 %v904_v24, %v555_v26  ;;  %v549_v30 = vadd.f32 %v548_v28, %v443_v27 }
 0x178   :  { %645 = vst [vmem:[#allocation2 + $0x8] sm:$0xff] %v641_v29  ;;  %v635_v32 = vadd.f32 %v634_v31, %v549_v30 }
 0x17a   :  { %644 = vst [vmem:[#allocation2] sm:$0xff] %v635_v32  ;;  %660 = vmax.xlane.f32.xlu1 %v635_v32  ;;  %v654_v44 = vsel %vm652_vm3, %v635_v32, 0.0 }
 0x17e   :  { %662 = vmax.xlane.f32.xlu1 %v641_v29 }
 0x18f   :  { %650 = vperm.xlu1 %911, %v20_v33  }
 0x203   :  { %v661_v34 = vpop.xlane.xlu1 %660 }
 0x204   :  { %v664_v35 = vsub.f32 %v635_v32, %v661_v34 }
 0x206   :  { %v666_v36 = vmul.f32 1.442695, %v664_v35 }
 0x207   :  { %v663_v37 = vpop.xlane.xlu1 %662 }
 0x208   :  { %912 = vpow2.f32 %v666_v36  ;;  %v665_v38 = vsub.f32 %v641_v29, %v663_v37 }
 0x20a   :  { %v668_v39 = vmul.f32 1.442695, %v665_v38 }
 0x20b   :  { %v651_v42 = vpop.permute.xlu1 %650 }
 0x20c   :  { %914 = vpow2.f32 %v668_v39  ;;  %vm653_vm4 = vcmp.eq.s32.totalorder %v1118_v59, %v651_v42 }
 0x20d   :  { %v655_v45 = vsel %vm653_vm4, %v641_v29, 0.0 }
 0x215   :  { %v913_v40 = vpop.eup %912 }
 0x216   :  { %670 = vadd.xlane.f32.xlu0 %v913_v40 }
 0x219   :  { %v915_v43 = vpop.eup %914 }
 0x21a   :  { %672 = vadd.xlane.f32.xlu1 %v915_v43  ;;  %656 = vadd.xlane.f32.xlu0 %v654_v44 }
 0x21e   :  { %658 = vadd.xlane.f32.xlu0 %v655_v45 }
 0x21f   :  { %931 = shalt.err (!%p928_p4)
}
 0x220   :  { %s945_s15 = smov 128   ;;  %s946_s16 = smov 8   ;;  %vm682_vm5 = vcmask 7168  }
 0x221   :  { %696 = dma.vmem_to_hbm [thread:$0]  %s691_s13, 256, %s1229_s3, [#allocation3], %s945_s15, %s945_s15, %s946_s16  }
 0x29f   :  { %v671_v46 = vpop.xlane.xlu0 %670 }
 0x2a0   :  { %916 = vlog2.f32 %v671_v46 }
 0x2a3   :  { %v673_v47 = vpop.xlane.xlu1 %672  ;;  %v657_v50 = vpop.xlane.xlu0 %656 }
 0x2a4   :  { %918 = vlog2.f32 %v673_v47 }
 0x2a7   :  { %v659_v56 = vpop.xlane.xlu0 %658 }
 0x2ad   :  { %v917_v48 = vpop.eup %916 }
 0x2ae   :  { %v675_v49 = vmul.f32 0.6931472, %v917_v48 }
 0x2b0   :  { %v678_v51 = vadd.f32 %v675_v49, %v661_v34 }
 0x2b1   :  { %v919_v52 = vpop.eup %918 }
 0x2b2   :  { %v677_v53 = vmul.f32 0.6931472, %v919_v52  ;;  %v680_v54 = vsub.f32 %v678_v51, %v657_v50 }
 0x2b4   :  { %683 = vst.msk [vmem:[%s1230_s4] sm:$0xff] %vm682_vm5, %v680_v54  ;;  %v679_v55 = vadd.f32 %v677_v53, %v663_v37 }
 0x2b6   :  { %v681_v57 = vsub.f32 %v679_v55, %v659_v56 }
 0x2b8   :  { %684 = vst.msk [vmem:[%s1230_s4 + $0x8] sm:$0xff] %vm682_vm5, %v681_v57 }
 0x2b9   :  { %940 = dma.done.wait [#allocation3], 256  }
 0x2ba   :  { %941 = vsyncadd [#allocation3], 4294967040 }
 0x2bb   :  { %704 = vsyncpa [#allocation3], 1 }

</bundles_post_ra>
